<compile_context>
chip_gen: v6e
topology: v6e:2x2x1
jax: 0.10.0
libtpu: 0.0.40
codegen_flags: <defaults>
</compile_context>

<pallas_src>
import functools

import jax
import jax.numpy as jnp
from jax.experimental import pallas as pl
from jax.experimental.pallas import tpu as pltpu


def _round_up(x, m):
    return (x + m - 1) // m * m


def patch_embed_kernel(x_ref, w_ref, p_ref, o_ref, *, inv_d, eps):
    # x_ref: (tm, K)  row tile of flattened patches
    # w_ref: (K, Dp)  flattened conv weight, zero-padded to Dp lanes
    # p_ref: (8, Dp)  packed params: row0=bias, row1=gamma, row2=beta, row3=lane mask
    # o_ref: (tm, Dp) lane-dense output tile
    y = jnp.dot(x_ref[...], w_ref[...], preferred_element_type=jnp.float32)
    bias = p_ref[0:1, :]
    gamma = p_ref[1:2, :]
    beta = p_ref[2:3, :]
    mask = p_ref[3:4, :]

    y = y + bias  # padded lanes stay exactly 0 (weight/bias pads are 0)

    # LayerNorm over the real D columns only (PyTorch defaults: eps=1e-5,
    # biased variance). Math stays in f32; rsqrt goes to the EUP slot.
    mean = jnp.sum(y, axis=-1, keepdims=True) * inv_d
    centered = y - mean
    cm = centered * mask  # exclude padded lanes from the variance
    var = jnp.sum(cm * cm, axis=-1, keepdims=True) * inv_d
    inv_std = jax.lax.rsqrt(var + eps)
    out = centered * inv_std * gamma + beta  # gamma/beta pads are 0 -> padded lanes stay 0
    o_ref[...] = out.astype(o_ref.dtype)


def patch_embed_forward(x, w_conv, b_conv, gamma, beta, patch_size,
                        *, tile_rows=512, matmul_dtype=None):
    """x: (B, C, H, W) NCHW, w_conv: (D, C, ph, pw), b_conv/gamma/beta: (D,)."""
    B, C, H, W = x.shape
    ph, pw = patch_size
    D = w_conv.shape[0]
    assert H % ph == 0 and W % pw == 0
    Hp, Wp = H // ph, W // pw
    N = Hp * Wp
    K = C * ph * pw
    M = B * N

    # Extract non-overlapping patches; flatten each in (C, kh, kw) order to
    # match Conv2d weight flattening, then fold batch into rows.
    patches = x.reshape(B, C, Hp, ph, Wp, pw)
    patches = patches.transpose(0, 2, 4, 1, 3, 5).reshape(M, K)

    # Pad embed_dim to a 128-lane multiple (lane-dense matmul + stores).
    Dp = _round_up(D, 128)
    w_flat = w_conv.reshape(D, K).T  # (K, D)
    w_pad = jnp.zeros((K, Dp), w_flat.dtype).at[:, :D].set(w_flat)

    # Pack bias / gamma / beta / lane-mask into one (8, Dp) parameter tile.
    lane = jnp.arange(Dp)
    params = jnp.zeros((8, Dp), jnp.float32)
    params = params.at[0, :D].set(b_conv.astype(jnp.float32))
    params = params.at[1, :D].set(gamma.astype(jnp.float32))
    params = params.at[2, :D].set(beta.astype(jnp.float32))
    params = params.at[3, :].set(jnp.where(lane < D, 1.0, 0.0))

    if matmul_dtype is not None:
        # Halves HBM traffic and doubles MXU throughput at real model sizes;
        # accumulation and LayerNorm stay in f32 inside the kernel.
        patches = patches.astype(matmul_dtype)
        w_pad = w_pad.astype(matmul_dtype)

    # Row tiling: large row tiles over the folded (B*N) dimension.
    tm = min(tile_rows, _round_up(M, 8))
    Mp = _round_up(M, tm)
    if Mp != M:
        patches = jnp.pad(patches, ((0, Mp - M), (0, 0)))
    num_tiles = Mp // tm

    in_bytes = jnp.dtype(patches.dtype).itemsize
    in_buffers = 3 if num_tiles >= 3 else 2
    vmem_est = (in_buffers * tm * K * in_bytes      # pipelined patch tiles
                + 2 * tm * Dp * 4                   # output tiles
                + 2 * K * Dp * in_bytes             # resident weight
                + 2 * 8 * Dp * 4)                   # resident params
    vmem_limit = int(min(max(2 * vmem_est, 16 * 1024 * 1024), 48 * 1024 * 1024))

    patches_spec_kwargs = {}
    if num_tiles >= 3:
        # Deeper input pipelining only when there are enough row tiles (and
        # the VMEM budget above already accounts for it).
        patches_spec_kwargs["pipeline_mode"] = pl.Buffered(3)

    kernel = functools.partial(patch_embed_kernel, inv_d=1.0 / D, eps=1e-5)

    cost = pl.CostEstimate(
        flops=2 * M * K * D,
        transcendentals=M,  # one rsqrt per row
        bytes_accessed=(M * K * in_bytes + K * Dp * in_bytes
                        + Mp * Dp * 4 + 8 * Dp * 4),
    )

    out = pl.pallas_call(
        kernel,
        out_shape=jax.ShapeDtypeStruct((Mp, Dp), jnp.float32),
        grid=(num_tiles,),
        in_specs=[
            pl.BlockSpec((tm, K), lambda i: (i, 0), **patches_spec_kwargs),
            pl.BlockSpec((K, Dp), lambda i: (0, 0)),   # weight stays resident
            pl.BlockSpec((8, Dp), lambda i: (0, 0)),   # params stay resident
        ],
        out_specs=pl.BlockSpec((tm, Dp), lambda i: (i, 0)),
        compiler_params=pltpu.CompilerParams(
            dimension_semantics=("parallel",),
            allow_input_fusion=[True, False, False],   # fuse patch transpose into DMA
            vmem_limit_bytes=vmem_limit,
        ),
        cost_estimate=cost,
    )(patches, w_pad, params)

    out = out[:M, :D].reshape(B, N, D)
    return out, (Hp, Wp)


def reference_forward(x, w_conv, b_conv, gamma, beta, patch_size):
    """Pure-JAX reference mirroring the PyTorch module semantics."""
    B, C, H, W = x.shape
    ph, pw = patch_size
    D = w_conv.shape[0]
    Hp, Wp = H // ph, W // pw
    patches = x.reshape(B, C, Hp, ph, Wp, pw).transpose(0, 2, 4, 1, 3, 5)
    patches = patches.reshape(B, Hp * Wp, C * ph * pw)
    y = patches @ w_conv.reshape(D, -1).T + b_conv
    mean = jnp.mean(y, axis=-1, keepdims=True)
    var = jnp.mean((y - mean) ** 2, axis=-1, keepdims=True)
    yn = (y - mean) / jnp.sqrt(var + 1e-5)
    return yn * gamma + beta, (Hp, Wp)


if __name__ == "__main__":
    # Small shapes consistent with the module: img_size=16, patch_size=4,
    # in_chans=4, embed_dim=32, batch=2.
    B, C, H, W = 2, 4, 16, 16
    patch_size = (4, 4)
    embed_dim = 32

    key = jax.random.PRNGKey(0)
    kx, kw, kb, kg, kbe = jax.random.split(key, 5)
    x = jax.random.normal(kx, (B, C, H, W), dtype=jnp.float32)
    w_conv = jax.random.normal(kw, (embed_dim, C, *patch_size), dtype=jnp.float32) * 0.02
    b_conv = jax.random.normal(kb, (embed_dim,), dtype=jnp.float32) * 0.02
    gamma = jnp.ones((embed_dim,), dtype=jnp.float32) + 0.1 * jax.random.normal(
        kg, (embed_dim,), dtype=jnp.float32)
    beta = 0.1 * jax.random.normal(kbe, (embed_dim,), dtype=jnp.float32)

    # f32 matmul here so the tight tolerance holds; pass matmul_dtype=jnp.bfloat16
    # at real model sizes (loosen tolerance to ~1e-2 in that case).
    out, (Hp, Wp) = patch_embed_forward(x, w_conv, b_conv, gamma, beta, patch_size)
    out = jax.block_until_ready(out)

    ref, _ = reference_forward(x, w_conv, b_conv, gamma, beta, patch_size)
    assert out.shape == (B, (H // patch_size[0]) * (W // patch_size[1]), embed_dim)
    assert (Hp, Wp) == (H // patch_size[0], W // patch_size[1])
    assert jnp.allclose(out, ref, atol=1e-4, rtol=1e-4)

    print("KERNEL_OK")
</pallas_src>

<mosaic_0001>
module attributes {stable_mosaic.version = 11 : i64} {
  func.func @patch_embed_kernel(%arg0: i32, %arg1: memref<32x64xf32, #tpu.memory_space<vmem>>, %arg2: memref<64x128xf32, #tpu.memory_space<vmem>>, %arg3: memref<8x128xf32, #tpu.memory_space<vmem>>, %arg4: memref<32x128xf32, #tpu.memory_space<vmem>>) attributes {dimension_semantics = [#tpu.dimension_semantics<parallel>], iteration_bounds = array<i64: 1>, scalar_prefetch = 0 : i64, scratch_operands = 0 : i64, tpu.core_type = #tpu.core_type<tc>, window_params = [{transform_indices = @transform_0, window_bounds = array<i64: 32, 64>}, {pipeline_mode = #tpu.pipeline_mode<synchronous>, transform_indices = @transform_1, window_bounds = array<i64: 64, 128>}, {pipeline_mode = #tpu.pipeline_mode<synchronous>, transform_indices = @transform_2, window_bounds = array<i64: 8, 128>}, {transform_indices = @transform_3, window_bounds = array<i64: 32, 128>}]} {
    %c0 = arith.constant 0 : index
    %c0_0 = arith.constant 0 : index
    %0 = vector.load %arg1[%c0, %c0_0] : memref<32x64xf32, #tpu.memory_space<vmem>>, vector<32x64xf32>
    %c0_1 = arith.constant 0 : index
    %c0_2 = arith.constant 0 : index
    %1 = vector.load %arg2[%c0_1, %c0_2] : memref<64x128xf32, #tpu.memory_space<vmem>>, vector<64x128xf32>
    %cst = arith.constant dense<0.000000e+00> : vector<32x128xf32>
    %2 = tpu.matmul %0, %1, %cst {dimension_numbers = #tpu.dot_dimension_numbers<[1], [0], [0], [1], [0, 0, 1, 1], [], []>} : vector<32x64xf32>, vector<64x128xf32>, vector<32x128xf32> -> vector<32x128xf32>
    %c0_3 = arith.constant 0 : index
    %c0_4 = arith.constant 0 : index
    %3 = vector.load %arg3[%c0_3, %c0_4] : memref<8x128xf32, #tpu.memory_space<vmem>>, vector<1x128xf32>
    %c1 = arith.constant 1 : index
    %c0_5 = arith.constant 0 : index
    %4 = vector.load %arg3[%c1, %c0_5] : memref<8x128xf32, #tpu.memory_space<vmem>>, vector<1x128xf32>
    %c2 = arith.constant 2 : index
    %c0_6 = arith.constant 0 : index
    %5 = vector.load %arg3[%c2, %c0_6] : memref<8x128xf32, #tpu.memory_space<vmem>>, vector<1x128xf32>
    %c3 = arith.constant 3 : index
    %c0_7 = arith.constant 0 : index
    %6 = vector.load %arg3[%c3, %c0_7] : memref<8x128xf32, #tpu.memory_space<vmem>>, vector<1x128xf32>
    %7 = vector.broadcast %3 : vector<1x128xf32> to vector<32x128xf32>
    %8 = arith.addf %2, %7 : vector<32x128xf32>
    %cst_8 = arith.constant dense<0.000000e+00> : vector<32xf32>
    %9 = vector.multi_reduction <add>, %8, %cst_8 [1] : vector<32x128xf32> to vector<32xf32>
    %10 = vector.shape_cast %9 : vector<32xf32> to vector<32x1xf32>
    %cst_9 = arith.constant 3.125000e-02 : f32
    %11 = vector.broadcast %cst_9 : f32 to vector<32x1xf32>
    %12 = arith.mulf %10, %11 : vector<32x1xf32>
    %13 = vector.broadcast %12 : vector<32x1xf32> to vector<32x128xf32>
    %14 = arith.subf %8, %13 : vector<32x128xf32>
    %15 = vector.broadcast %6 : vector<1x128xf32> to vector<32x128xf32>
    %16 = arith.mulf %14, %15 : vector<32x128xf32>
    %17 = arith.mulf %16, %16 : vector<32x128xf32>
    %cst_10 = arith.constant dense<0.000000e+00> : vector<32xf32>
    %18 = vector.multi_reduction <add>, %17, %cst_10 [1] : vector<32x128xf32> to vector<32xf32>
    %19 = vector.shape_cast %18 : vector<32xf32> to vector<32x1xf32>
    %cst_11 = arith.constant 3.125000e-02 : f32
    %20 = vector.broadcast %cst_11 : f32 to vector<32x1xf32>
    %21 = arith.mulf %19, %20 : vector<32x1xf32>
    %cst_12 = arith.constant 9.99999974E-6 : f32
    %22 = vector.broadcast %cst_12 : f32 to vector<32x1xf32>
    %23 = arith.addf %21, %22 : vector<32x1xf32>
    %24 = math.rsqrt %23 : vector<32x1xf32>
    %25 = vector.broadcast %24 : vector<32x1xf32> to vector<32x128xf32>
    %26 = arith.mulf %14, %25 : vector<32x128xf32>
    %27 = vector.broadcast %4 : vector<1x128xf32> to vector<32x128xf32>
    %28 = arith.mulf %26, %27 : vector<32x128xf32>
    %29 = vector.broadcast %5 : vector<1x128xf32> to vector<32x128xf32>
    %30 = arith.addf %28, %29 : vector<32x128xf32>
    %c0_13 = arith.constant 0 : index
    %c0_14 = arith.constant 0 : index
    %31 = vector.load %arg4[%c0_13, %c0_14] : memref<32x128xf32, #tpu.memory_space<vmem>>, vector<32x128xf32>
    tpu.vector_store %arg4[%c0_13, %c0_14], %30 {strides = array<i32>} : memref<32x128xf32, #tpu.memory_space<vmem>>, vector<32x128xf32>,
    return
  }
  func.func @transform_0(%arg0: i32) -> (i32, i32) {
    %c0_i32 = arith.constant 0 : i32
    %c0_i32_0 = arith.constant 0 : i32
    return %arg0, %c0_i32 : i32, i32
  }
  func.func @transform_1(%arg0: i32) -> (i32, i32) {
    %c0_i32 = arith.constant 0 : i32
    %c0_i32_0 = arith.constant 0 : i32
    %c0_i32_1 = arith.constant 0 : i32
    return %c0_i32, %c0_i32_0 : i32, i32
  }
  func.func @transform_2(%arg0: i32) -> (i32, i32) {
    %c0_i32 = arith.constant 0 : i32
    %c0_i32_0 = arith.constant 0 : i32
    %c0_i32_1 = arith.constant 0 : i32
    return %c0_i32, %c0_i32_0 : i32, i32
  }
  func.func @transform_3(%arg0: i32) -> (i32, i32) {
    %c0_i32 = arith.constant 0 : i32
    %c0_i32_0 = arith.constant 0 : i32
    return %arg0, %c0_i32 : i32, i32
  }
}

</mosaic_0001>

<bundles_post_ra>
// kernel: tpu_custom_call.1
= control target key start
LH: loop header
LB: loop body
LE: loop exit
PB: predicated region body
PF: predicated region fallthrough
CT: control target
= control target key end

     0   :  { %8 = vsyncpa [#allocation3], 0  ;;  %s467_s0 = inlined_call_operand.hbm [shape: f32[32,64], index: 0, kind: input, shape index: {}]   ;;  %s468_s1 = inlined_call_operand.hbm [shape: f32[64,128], index: 1, kind: input, shape index: {}]   ;;  %s469_s2 = inlined_call_operand.hbm [shape: f32[8,128], index: 2, kind: input, shape index: {}]   ;;  %s470_s3 = inlined_call_operand.hbm [shape: f32[32,128], index: 3, kind: output, shape index: {}]  }
   0x1   :  { %9 = vsyncpa [#allocation6], 0 }
   0x2   :  { %10 = vsyncpa [#allocation4], 0  ;;  %s420_s12 = smov [#allocation5]   ;;  %s421_s14 = smov [#allocation2]  }
   0x3   :  { %s28_s13 = sshll.u32 %s420_s12, 4  ;;  %s16_s15 = sshll.u32 %s421_s14, 4  ;;  %s29_s13 = int_to_ptr.vmem [resolvable:$true] %s28_s13  ;;  %s17_s15 = int_to_ptr.vmem [resolvable:$true] %s16_s15 }
   0x4   :  { %s342_s16 = scalar_lea.vmem %s29_s13, 1024  ;;  %p347_p1 = scmp.lt.s32.totalorder %s29_s13, %s29_s13 }
   0x5   :  { %p343_p0 = scmp.ne.s32.totalorder %s29_s13, %s342_s16  ;;  %p348_p2 = scmp.lt.s32.totalorder %s342_s16, %s342_s16 }
   0x7   :  { %p349_p3 = por %p348_p2, %p347_p1 }
   0x9   :  { %p350_p4 = pnand %p349_p3, %p343_p0 }
   0xb   :  { %353 = shalt.err (!%p350_p4)
}
   0xc   :  { %s422_s17 = smov 128   ;;  %s423_s18 = smov 8  }
   0xd   :  { %34 = dma.hbm_to_vmem [thread:$0]  %s468_s1, 1024, %s29_s13, [#allocation6], %s422_s17, %s422_s17, %s423_s18  }
   0xe   :  { %s362_s21 = scalar_lea.vmem %s17_s15, 512  ;;  %p367_p6 = scmp.lt.s32.totalorder %s17_s15, %s17_s15 }
   0xf   :  { %p363_p5 = scmp.ne.s32.totalorder %s17_s15, %s362_s21  ;;  %p368_p7 = scmp.lt.s32.totalorder %s362_s21, %s362_s21 }
  0x11   :  { %p369_p8 = por %p368_p7, %p367_p6 }
  0x13   :  { %p370_p9 = pnand %p369_p8, %p363_p5 }
  0x15   :  { %373 = shalt.err (!%p370_p9)
}
  0x16   :  { %22 = dma.hbm_to_vmem [thread:$0]  %s467_s0, 512, %s17_s15, [#allocation3], %s422_s17, %s422_s17, %s423_s18  }
  0x17   :  { %s424_s24 = smov [#allocation7]  }
  0x18   :  { %s41_s25 = sshll.u32 %s424_s24, 4  ;;  %s42_s25 = int_to_ptr.vmem [resolvable:$true] %s41_s25 }
  0x19   :  { %s382_s26 = scalar_lea.vmem %s42_s25, 128  ;;  %p387_p11 = scmp.lt.s32.totalorder %s42_s25, %s42_s25 }
  0x1a   :  { %p383_p10 = scmp.ne.s32.totalorder %s42_s25, %s382_s26  ;;  %p388_p12 = scmp.lt.s32.totalorder %s382_s26, %s382_s26 }
  0x1c   :  { %p389_p13 = por %p388_p12, %p387_p11 }
  0x1e   :  { %p390_p0 = pnand %p389_p13, %p383_p10 }
  0x20   :  { %393 = shalt.err (!%p390_p0)
}
  0x21   :  { %44 = dma.hbm_to_vmem [thread:$0]  %s469_s2, 128, %s42_s25, [#allocation6]  }
  0x22   :  { %414 = dma.done.wait [#allocation3], 512  }
  0x23   :  { %415 = vsyncadd [#allocation3], 4294966784 }
  0x24   :  { %416 = dma.done.wait [#allocation6], 1152  }
  0x25   :  { %417 = vsyncadd [#allocation6], 4294966144  ;;  %v65_v0 = vld [vmem:[#allocation5 + $0x38] sm:$0xff]  ;;  %v64_v1 = vld [vmem:[#allocation5 + $0x30] sm:$0xff]  ;;  %vm74_vm0 = vcmask 523264   ;;  %s425_s0 = smov [#allocation8]  }
  0x26   :  { %282 = vmatprep.subr.mxu0 %v65_v0  ;;  %304 = vmatprep.subr.mxu1 %v65_v0  ;;  %v63_v2 = vld [vmem:[#allocation5 + $0x28] sm:$0xff]  ;;  %v62_v3 = vld [vmem:[#allocation5 + $0x20] sm:$0xff]  ;;  %v61_v4 = vld [vmem:[#allocation5 + $0x18] sm:$0xff]  ;;  %s249_s2 = sshll.u32 %s425_s0, 4  ;;  %s250_s2 = int_to_ptr.vmem [resolvable:$true] %s249_s2 }
  0x27   :  { %283 = vmatpush3.msra.mxu0 %v65_v0  ;;  %312 = vmatpush3.msra.mxu1 %v65_v0  ;;  %v60_v5 = vld [vmem:[#allocation5 + $0x10] sm:$0xff]  ;;  %v59_v6 = vld [vmem:[#allocation5 + $0x8] sm:$0xff]  ;;  %v58_v7 = vld [vmem:[#allocation5] sm:$0xff]  ;;  %s394_s28 = scalar_lea.vmem %s250_s2, 512  ;;  %p399_p2 = scmp.lt.s32.totalorder %s250_s2, %s250_s2 }
  0x28   :  { %284 = vmatprep.subr.mxu0 %v64_v1  ;;  %305 = vmatprep.subr.mxu1 %v64_v1  ;;  %v54_v8 = vld [vmem:[#allocation2] sm:$0xff]  ;;  %v56_v9 = vld [vmem:[#allocation2 + $0x10] sm:$0xff]  ;;  %v55_v10 = vld [vmem:[#allocation2 + $0x8] sm:$0xff]  ;;  %p395_p1 = scmp.ne.s32.totalorder %s250_s2, %s394_s28  ;;  %p400_p3 = scmp.lt.s32.totalorder %s394_s28, %s394_s28 }
  0x29   :  { %285 = vmatpush3.msra.mxu0 %v64_v1  ;;  %313 = vmatpush3.msra.mxu1 %v64_v1  ;;  %v57_v11 = vld [vmem:[#allocation2 + $0x18] sm:$0xff]  ;;  %v262_v14 = vld [vmem:[#allocation7] ss:$0 sm:$0xff]  ;;  %v267_v25 = vld [vmem:[#allocation7 + $0x3] ss:$0 sm:$0xff] }
  0x2a   :  { %286 = vmatprep.subr.mxu0 %v63_v2  ;;  %306 = vmatprep.subr.mxu1 %v63_v2  ;;  %v268_v55 = vld [vmem:[#allocation7 + $0x1] ss:$0 sm:$0xff]  ;;  %v269_v57 = vld [vmem:[#allocation7 + $0x2] ss:$0 sm:$0xff]  ;;  %p401_p4 = por %p400_p3, %p399_p2 }
  0x2b   :  { %287 = vmatpush3.msra.mxu0 %v63_v2  ;;  %314 = vmatpush3.msra.mxu1 %v63_v2 }
  0x2c   :  { %288 = vmatprep.subr.mxu0 %v62_v3  ;;  %307 = vmatprep.subr.mxu1 %v62_v3  ;;  %p402_p5 = pnand %p401_p4, %p395_p1 }
  0x2d   :  { %289 = vmatpush3.msra.mxu0 %v62_v3  ;;  %315 = vmatpush3.msra.mxu1 %v62_v3 }
  0x2e   :  { %290 = vmatprep.subr.mxu0 %v61_v4  ;;  %308 = vmatprep.subr.mxu1 %v61_v4 }
  0x2f   :  { %291 = vmatpush3.msra.mxu0 %v61_v4  ;;  %316 = vmatpush3.msra.mxu1 %v61_v4 }
  0x30   :  { %292 = vmatprep.subr.mxu0 %v60_v5  ;;  %309 = vmatprep.subr.mxu1 %v60_v5 }
  0x31   :  { %293 = vmatpush3.msra.mxu0 %v60_v5  ;;  %317 = vmatpush3.msra.mxu1 %v60_v5 }
  0x32   :  { %294 = vmatprep.subr.mxu0 %v59_v6  ;;  %310 = vmatprep.subr.mxu1 %v59_v6 }
  0x33   :  { %295 = vmatpush3.msra.mxu0 %v59_v6  ;;  %318 = vmatpush3.msra.mxu1 %v59_v6 }
  0x34   :  { %296 = vmatprep.subr.mxu0 %v58_v7  ;;  %311 = vmatprep.subr.mxu1 %v58_v7 }
  0x35   :  { %297 = vmatpush3.msra.mxu0 %v58_v7  ;;  %319 = vmatpush3.msra.mxu1 %v58_v7 }
  0x36   :  { %298 = vmatprep.mubr.msk.f32.mxu0 %vm74_vm0, %v54_v8  ;;  %301 = vmatprep.mubr.msk.f32.mxu1 %vm74_vm0, %v56_v9 }
  0x37   :  { %299 = vmatmul.mubr.msk.f32.vlgmr.msra.gmra.mxu0 %vm74_vm0, %v55_v10  ;;  %302 = vmatmul.mubr.msk.f32.vlgmr.msra.gmra.mxu1 %vm74_vm0, %v57_v11 }
  0xf7   :  { %v300_v12 = vpop.f32.mrf.mxu0  ;;  %v303_v13 = vpop.f32.mrf.mxu1 }
  0xf8   :  { %v159_v19 = vadd.f32 %v300_v12, %v262_v14  ;;  %v169_v20 = vadd.f32 %v303_v13, %v262_v14 }
  0xf9   :  { %v153_v15 = vpop.f32.mrf.mxu0  ;;  %v163_v16 = vpop.f32.mrf.mxu1 }
  0xfa   :  { %v154_v17 = vadd.f32 %v262_v14, %v153_v15  ;;  %v164_v18 = vadd.f32 %v262_v14, %v163_v16 }
  0xfc   :  { %176 = vadd.xlane.f32.xlu1 %v164_v18  ;;  %172 = vadd.xlane.f32.xlu0 %v154_v17 }
 0x100   :  { %178 = vadd.xlane.f32.xlu1 %v169_v20  ;;  %174 = vadd.xlane.f32.xlu0 %v159_v19 }
 0x185   :  { %v177_v21 = vpop.xlane.xlu1 %176  ;;  %v173_v22 = vpop.xlane.xlu0 %172 }
 0x186   :  { %v182_v23 = vmul.f32 0.03125, %v177_v21  ;;  %v180_v24 = vmul.f32 0.03125, %v173_v22 }
 0x188   :  { %v186_v26 = vsub.f32 %v164_v18, %v182_v23  ;;  %v184_v27 = vsub.f32 %v154_v17, %v180_v24 }
 0x189   :  { %v179_v28 = vpop.xlane.xlu1 %178  ;;  %v175_v29 = vpop.xlane.xlu0 %174 }
 0x18a   :  { %v183_v30 = vmul.f32 0.03125, %v179_v28  ;;  %v181_v31 = vmul.f32 0.03125, %v175_v29  ;;  %v192_v32 = vmul.f32 %v267_v25, %v184_v27  ;;  %v194_v36 = vmul.f32 %v267_v25, %v186_v26 }
 0x18c   :  { %v187_v33 = vsub.f32 %v169_v20, %v183_v30  ;;  %v185_v34 = vsub.f32 %v159_v19, %v181_v31  ;;  %v196_v35 = vmul.f32 %v192_v32, %v192_v32  ;;  %v198_v38 = vmul.f32 %v194_v36, %v194_v36 }
 0x18e   :  { %200 = vadd.xlane.f32.xlu0 %v196_v35  ;;  %v193_v37 = vmul.f32 %v267_v25, %v185_v34  ;;  %v195_v40 = vmul.f32 %v267_v25, %v187_v33 }
 0x190   :  { %v197_v39 = vmul.f32 %v193_v37, %v193_v37  ;;  %v199_v41 = vmul.f32 %v195_v40, %v195_v40 }
 0x192   :  { %204 = vadd.xlane.f32.xlu0 %v198_v38  ;;  %202 = vadd.xlane.f32.xlu1 %v197_v39 }
 0x196   :  { %206 = vadd.xlane.f32.xlu1 %v199_v41 }
 0x217   :  { %v201_v42 = vpop.xlane.xlu0 %200 }
 0x218   :  { %v208_v43 = vmul.f32 0.03125, %v201_v42 }
 0x21a   :  { %v212_v44 = vadd.f32 1e-05, %v208_v43 }
 0x21b   :  { %v203_v45 = vpop.xlane.xlu1 %202  ;;  %v205_v46 = vpop.xlane.xlu0 %204 }
 0x21c   :  { %326 = vrsqrt.f32 %v212_v44  ;;  %v209_v47 = vmul.f32 0.03125, %v203_v45  ;;  %v210_v48 = vmul.f32 0.03125, %v205_v46 }
 0x21e   :  { %v213_v49 = vadd.f32 1e-05, %v209_v47  ;;  %v214_v50 = vadd.f32 1e-05, %v210_v48 }
 0x21f   :  { %v207_v51 = vpop.xlane.xlu1 %206 }
 0x220   :  { %328 = vrsqrt.f32 %v213_v49  ;;  %v211_v52 = vmul.f32 0.03125, %v207_v51 }
 0x221   :  { %330 = vrsqrt.f32 %v214_v50 }
 0x222   :  { %v215_v53 = vadd.f32 1e-05, %v211_v52 }
 0x224   :  { %332 = vrsqrt.f32 %v215_v53 }
 0x229   :  { %v327_v54 = vpop.eup %326 }
 0x22a   :  { %v220_v56 = vmul.f32 %v327_v54, %v184_v27 }
 0x22c   :  { %v228_v58 = vmul.f32 %v268_v55, %v220_v56 }
 0x22d   :  { %v329_v59 = vpop.eup %328 }
 0x22e   :  { %v331_v60 = vpop.eup %330  ;;  %v221_v61 = vmul.f32 %v329_v59, %v185_v34  ;;  %v236_v62 = vadd.f32 %v269_v57, %v228_v58 }
 0x22f   :  { %v222_v63 = vmul.f32 %v331_v60, %v186_v26 }
 0x230   :  { %v229_v0 = vmul.f32 %v268_v55, %v221_v61  ;;  %240 = vst [vmem:[#allocation8] sm:$0xff] %v236_v62 }
 0x231   :  { %v333_v1 = vpop.eup %332  ;;  %v230_v2 = vmul.f32 %v268_v55, %v222_v63 }
 0x232   :  { %v223_v3 = vmul.f32 %v333_v1, %v187_v33  ;;  %v237_v4 = vadd.f32 %v269_v57, %v229_v0 }
 0x233   :  { %v238_v5 = vadd.f32 %v269_v57, %v230_v2 }
 0x234   :  { %v231_v6 = vmul.f32 %v268_v55, %v223_v3  ;;  %241 = vst [vmem:[#allocation8 + $0x8] sm:$0xff] %v237_v4 }
 0x235   :  { %242 = vst [vmem:[#allocation8 + $0x10] sm:$0xff] %v238_v5 }
 0x236   :  { %v239_v7 = vadd.f32 %v269_v57, %v231_v6 }
 0x238   :  { %243 = vst [vmem:[#allocation8 + $0x18] sm:$0xff] %v239_v7 }
 0x239   :  { %405 = shalt.err (!%p402_p5)
}
 0x23a   :  { %255 = dma.vmem_to_hbm [thread:$0]  %s250_s2, 512, %s470_s3, [#allocation4], %s422_s17, %s422_s17, %s423_s18  }
 0x23b   :  { %418 = dma.done.wait [#allocation4], 512  }
 0x23c   :  { %419 = vsyncadd [#allocation4], 4294966784 }
 0x23d   :  { %259 = vsyncpa [#allocation3], 1 }
 0x23e   :  { %260 = vsyncpa [#allocation6], 1 }
 0x23f   :  { %261 = vsyncpa [#allocation4], 1 }

</bundles_post_ra>
